<compile_context>
chip_gen: v5e
topology: v5e:2x2
jax: 0.10.0
libtpu: 0.0.40
codegen_flags: <defaults>
</compile_context>

<pallas_src>
import jax
import jax.numpy as jnp
from jax import lax
from jax.experimental import pallas as pl
from jax.experimental.pallas import tpu as pltpu


def _round_up(x: int, m: int) -> int:
    return ((x + m - 1) // m) * m


def _pick_tile(n: int, align: int, cap: int) -> int:
    """Tile for a dim with n > cap: the largest multiple of `align` <= cap whose
    padding waste is <= 1/8 of n, else the candidate with minimal waste."""
    best_t = align
    best_pad = _round_up(n, align) - n
    for t in range(cap - cap % align, align - 1, -align):
        pad = _round_up(n, t) - n
        if pad * 8 <= n:
            return t
        if pad < best_pad:
            best_t, best_pad = t, pad
    return best_t


def _vmem_limit_bytes() -> int:
    """Generation-aware scoped-VMEM limit: ~3/4 of physical VMEM, capped at 110 MiB.
    v5e/v6e (128 MiB) -> 96 MiB; v7x (64 MiB) -> 48 MiB.  Conservative fallback if the
    hardware query is unavailable."""
    try:
        cap = int(pltpu.get_tpu_info().vmem_capacity_bytes)
    except Exception:
        cap = 64 * 1024 * 1024  # v7x per-TensorCore VMEM: safe lower bound everywhere
    return min(cap * 3 // 4, 110 * 1024 * 1024)


# --------------------------------------------------------------------------- kernels
def _ts_linear_kernel_single_k(x_ref, w_ref, b_ref, o_ref):
    """out = x @ W^T + b with the whole contraction in one block: store directly,
    no accumulator scratch / zero-init / VMEM round-trip."""
    acc = lax.dot_general(
        x_ref[...], w_ref[...],
        dimension_numbers=(((1,), (1,)), ((), ())),   # x(m,k) . W(n,k) -> (m,n)
        preferred_element_type=jnp.float32,
    )
    o_ref[...] = (acc + b_ref[...]).astype(o_ref.dtype)


def _ts_linear_kernel_multi_k(x_ref, w_ref, b_ref, o_ref, acc_ref):
    """K-tiled path: first K block writes the partial product (no zero-init pass),
    later blocks accumulate; bias-add + store only in the final-K epilogue."""
    k = pl.program_id(2)
    part = lax.dot_general(
        x_ref[...], w_ref[...],
        dimension_numbers=(((1,), (1,)), ((), ())),
        preferred_element_type=jnp.float32,
    )

    @pl.when(k == 0)
    def _():
        acc_ref[...] = part

    @pl.when(k > 0)
    def _():
        acc_ref[...] += part

    @pl.when(k == pl.num_programs(2) - 1)
    def _():
        o_ref[...] = (acc_ref[...] + b_ref[...]).astype(o_ref.dtype)


# --------------------------------------------------------------------------- wrapper
def make_time_series_linear(weight, bias, n_output_time_steps, n_output_state_variables,
                            *, dtype=jnp.float32, compute_dtype=None,
                            tm_max=512, tn_max=512, tk_max=2048):
    """Build a Pallas TimeSeriesLinear forward.

    Tile selection and all weight/bias padding happen ONCE here (parameter-load time);
    the returned `apply(inputs)` does no per-call parameter copies.

    weight : (F_out, F_in)  torch.nn.Linear layout (kept as-is, no HBM transpose)
    bias   : (F_out,) or None
    compute_dtype : MXU operand dtype (pass jnp.bfloat16 for the fast path; f32
                    accumulation is kept either way).  Defaults to `dtype` for exact
                    parity with the torch module.
    """
    if compute_dtype is None:
        compute_dtype = dtype
    itemsize = jnp.dtype(compute_dtype).itemsize
    align_m = 8 * max(1, 4 // itemsize)          # sublane align: 8 (f32) / 16 (bf16)

    f_out, f_in = weight.shape
    assert f_out == n_output_time_steps * n_output_state_variables

    # --- K (contraction) tiling: prefer a single full-dim K block (the common case,
    #     since f_in = Ti*Si is usually small for this module). ---------------------
    if f_in <= tk_max:
        tk, f_in_p = f_in, f_in
    else:
        tk = _pick_tile(f_in, 128, tk_max)
        f_in_p = _round_up(f_in, tk)
    k_grid = f_in_p // tk

    # --- N (f_out) tiling: full-dim block when it fits (zero padding).  When it is
    #     free (f_out % 256 == 0) split N in two so v7x's second TensorCore gets a
    #     parallel block even at M_grid == 1. ---------------------------------------
    if f_out <= tn_max:
        f_out_p = f_out
        tn = f_out // 2 if (f_out >= 256 and f_out % 256 == 0) else f_out
    else:
        tn = _pick_tile(f_out, 128, tn_max)
        f_out_p = _round_up(f_out, tn)

    # --- Pad parameters ONCE (no per-call HBM read+write of W). --------------------
    w_c = weight.astype(compute_dtype)                       # (F_out, F_in) torch layout
    if (f_out_p, f_in_p) != (f_out, f_in):
        w_c = jnp.zeros((f_out_p, f_in_p), compute_dtype).at[:f_out, :f_in].set(w_c)
    b_f32 = (jnp.zeros((f_out,), jnp.float32) if bias is None
             else bias.astype(jnp.float32))                  # bias=None -> zero add (tiny)
    b_c = jnp.zeros((1, f_out_p), jnp.float32).at[0, :f_out].set(b_f32)

    vmem_limit = _vmem_limit_bytes()

    def apply(inputs):
        B = inputs.shape[0]
        assert inputs.shape[1] * inputs.shape[2] == f_in
        # Glue: cast like the torch module, flatten(start_dim=1), then to compute dtype.
        x = inputs.astype(dtype).reshape(B, f_in).astype(compute_dtype)

        # Adaptive M tiling: full-dim block (zero padding) whenever B fits one tile.
        if B <= tm_max:
            tm, Bp = B, B
        else:
            tm = _pick_tile(B, align_m, tm_max)
            Bp = _round_up(B, tm)
        if (Bp, f_in_p) != (B, f_in):
            x = jnp.zeros((Bp, f_in_p), compute_dtype).at[:B, :f_in].set(x)

        m_grid, n_grid = Bp // tm, f_out_p // tn
        out_shape = jax.ShapeDtypeStruct((Bp, f_out_p), dtype)

        if k_grid == 1:
            out_p = pl.pallas_call(
                _ts_linear_kernel_single_k,
                out_shape=out_shape,
                grid_spec=pltpu.PrefetchScalarGridSpec(
                    num_scalar_prefetch=0,
                    grid=(m_grid, n_grid),
                    in_specs=[
                        pl.BlockSpec((tm, tk), lambda i, j: (i, 0)),   # x
                        pl.BlockSpec((tn, tk), lambda i, j: (j, 0)),   # W (out, in)
                        pl.BlockSpec((1, tn), lambda i, j: (0, j)),    # bias (f32)
                    ],
                    out_specs=pl.BlockSpec((tm, tn), lambda i, j: (i, j)),
                ),
                compiler_params=pltpu.CompilerParams(
                    dimension_semantics=("parallel", "parallel"),
                    vmem_limit_bytes=vmem_limit,
                ),
            )(x, w_c, b_c)
        else:
            out_p = pl.pallas_call(
                _ts_linear_kernel_multi_k,
                out_shape=out_shape,
                grid_spec=pltpu.PrefetchScalarGridSpec(
                    num_scalar_prefetch=0,
                    grid=(m_grid, n_grid, k_grid),
                    in_specs=[
                        pl.BlockSpec((tm, tk), lambda i, j, k: (i, k)),   # x
                        pl.BlockSpec((tn, tk), lambda i, j, k: (j, k)),   # W (out, in)
                        pl.BlockSpec((1, tn), lambda i, j, k: (0, j)),    # bias (f32)
                    ],
                    out_specs=pl.BlockSpec((tm, tn), lambda i, j, k: (i, j)),
                    scratch_shapes=[pltpu.VMEM((tm, tn), jnp.float32)],
                ),
                compiler_params=pltpu.CompilerParams(
                    dimension_semantics=("parallel", "parallel", "arbitrary"),
                    vmem_limit_bytes=vmem_limit,
                ),
            )(x, w_c, b_c)

        out = out_p if (Bp, f_out_p) == (B, f_out) else out_p[:B, :f_out]
        return out.reshape(B, n_output_time_steps, n_output_state_variables)

    return jax.jit(apply)


def time_series_linear(inputs, weight, bias, n_output_time_steps,
                       n_output_state_variables, **kwargs):
    """One-shot convenience wrapper (re-pads params every call; prefer the builder)."""
    fwd = make_time_series_linear(weight, bias, n_output_time_steps,
                                  n_output_state_variables, **kwargs)
    return fwd(inputs)


if __name__ == "__main__":
    key = jax.random.PRNGKey(0)
    k_x, k_w, k_b, k_x2, k_w2, k_b2 = jax.random.split(key, 6)

    # --- Case 1: typical small module shapes; single-K kernel, zero padding. -------
    B, Ti, Si, To, So = 2, 8, 4, 4, 8
    f_in, f_out = Ti * Si, To * So                        # 32, 32
    bound = 1.0 / f_in ** 0.5
    weight = jax.random.uniform(k_w, (f_out, f_in), jnp.float32, -bound, bound)
    bias = jax.random.uniform(k_b, (f_out,), jnp.float32, -bound, bound)
    inputs = jax.random.normal(k_x, (B, Ti, Si), jnp.float32)
    ref = (inputs.reshape(B, f_in) @ weight.T + bias).reshape(B, To, So)

    fwd = make_time_series_linear(weight, bias, To, So, dtype=jnp.float32)
    out = jax.block_until_ready(fwd(inputs))
    assert out.shape == (B, To, So)
    assert jnp.allclose(out, ref, atol=1e-5, rtol=1e-5)

    # bf16-operand MXU fast path (f32 accumulation): looser tolerance.
    fwd_bf16 = make_time_series_linear(weight, bias, To, So, dtype=jnp.float32,
                                       compute_dtype=jnp.bfloat16)
    out_bf16 = jax.block_until_ready(fwd_bf16(inputs))
    assert jnp.allclose(out_bf16, ref, atol=5e-2, rtol=5e-2)

    # use_bias=False path.
    fwd_nb = make_time_series_linear(weight, None, To, So)
    out_nb = jax.block_until_ready(fwd_nb(inputs))
    ref_nb = (inputs.reshape(B, f_in) @ weight.T).reshape(B, To, So)
    assert jnp.allclose(out_nb, ref_nb, atol=1e-5, rtol=1e-5)

    # --- Case 2: force the multi-K accumulator path (tk_max=128 -> K grid of 2). ---
    B2, Ti2, Si2, To2, So2 = 4, 16, 16, 4, 8
    f_in2, f_out2 = Ti2 * Si2, To2 * So2                  # 256, 32
    bound2 = 1.0 / f_in2 ** 0.5
    weight2 = jax.random.uniform(k_w2, (f_out2, f_in2), jnp.float32, -bound2, bound2)
    bias2 = jax.random.uniform(k_b2, (f_out2,), jnp.float32, -bound2, bound2)
    inputs2 = jax.random.normal(k_x2, (B2, Ti2, Si2), jnp.float32)
    ref2 = (inputs2.reshape(B2, f_in2) @ weight2.T + bias2).reshape(B2, To2, So2)

    fwd2 = make_time_series_linear(weight2, bias2, To2, So2, tk_max=128)
    out2 = jax.block_until_ready(fwd2(inputs2))
    assert jnp.allclose(out2, ref2, atol=1e-5, rtol=1e-5)

    print("KERNEL_OK")
</pallas_src>

<mosaic_0001>
module attributes {stable_mosaic.version = 11 : i64} {
  func.func @_ts_linear_kernel_single_k(%arg0: i32, %arg1: i32, %arg2: memref<2x32xf32, #tpu.memory_space<vmem>>, %arg3: memref<32x32xf32, #tpu.memory_space<vmem>>, %arg4: memref<1x32xf32, #tpu.memory_space<vmem>>, %arg5: memref<2x32xf32, #tpu.memory_space<vmem>>) attributes {dimension_semantics = [#tpu.dimension_semantics<parallel>, #tpu.dimension_semantics<parallel>], iteration_bounds = array<i64: 1, 1>, scalar_prefetch = 0 : i64, scratch_operands = 0 : i64, tpu.core_type = #tpu.core_type<tc>, window_params = [{transform_indices = @transform_0, window_bounds = array<i64: 2, 32>}, {transform_indices = @transform_1, window_bounds = array<i64: 32, 32>}, {transform_indices = @transform_2, window_bounds = array<i64: 1, 32>}, {transform_indices = @transform_3, window_bounds = array<i64: 2, 32>}]} {
    %c0 = arith.constant 0 : index
    %c0_0 = arith.constant 0 : index
    %0 = vector.load %arg2[%c0, %c0_0] : memref<2x32xf32, #tpu.memory_space<vmem>>, vector<2x32xf32>
    %c0_1 = arith.constant 0 : index
    %c0_2 = arith.constant 0 : index
    %1 = vector.load %arg3[%c0_1, %c0_2] : memref<32x32xf32, #tpu.memory_space<vmem>>, vector<32x32xf32>
    %cst = arith.constant dense<0.000000e+00> : vector<2x32xf32>
    %2 = tpu.matmul %0, %1, %cst {dimension_numbers = #tpu.dot_dimension_numbers<[1], [1], [0], [0], [0, 0, 1, 0], [], []>} : vector<2x32xf32>, vector<32x32xf32>, vector<2x32xf32> -> vector<2x32xf32>
    %c0_3 = arith.constant 0 : index
    %c0_4 = arith.constant 0 : index
    %3 = vector.load %arg4[%c0_3, %c0_4] : memref<1x32xf32, #tpu.memory_space<vmem>>, vector<1x32xf32>
    %4 = vector.broadcast %3 : vector<1x32xf32> to vector<2x32xf32>
    %5 = arith.addf %2, %4 : vector<2x32xf32>
    %c0_5 = arith.constant 0 : index
    %c0_6 = arith.constant 0 : index
    %6 = vector.load %arg5[%c0_5, %c0_6] : memref<2x32xf32, #tpu.memory_space<vmem>>, vector<2x32xf32>
    tpu.vector_store %arg5[%c0_5, %c0_6], %5 {strides = array<i32>} : memref<2x32xf32, #tpu.memory_space<vmem>>, vector<2x32xf32>,
    return
  }
  func.func @transform_0(%arg0: i32, %arg1: i32) -> (i32, i32) {
    %c0_i32 = arith.constant 0 : i32
    %c0_i32_0 = arith.constant 0 : i32
    return %arg0, %c0_i32 : i32, i32
  }
  func.func @transform_1(%arg0: i32, %arg1: i32) -> (i32, i32) {
    %c0_i32 = arith.constant 0 : i32
    %c0_i32_0 = arith.constant 0 : i32
    return %arg1, %c0_i32 : i32, i32
  }
  func.func @transform_2(%arg0: i32, %arg1: i32) -> (i32, i32) {
    %c0_i32 = arith.constant 0 : i32
    %c0_i32_0 = arith.constant 0 : i32
    return %c0_i32, %arg1 : i32, i32
  }
  func.func @transform_3(%arg0: i32, %arg1: i32) -> (i32, i32) {
    %c0_i32 = arith.constant 0 : i32
    return %arg0, %arg1 : i32, i32
  }
}

</mosaic_0001>

<bundles_post_ra>
// kernel: apply.1
= control target key start
LH: loop header
LB: loop body
LE: loop exit
PB: predicated region body
PF: predicated region fallthrough
CT: control target
= control target key end

     0   :  { %vm23_vm0 = vcmask 261120   ;;  %vm59_vm1 = vcmask 254976   ;;  %s112_s1 = inlined_call_operand.vmem [shape: f32[32,32], index: 1, kind: input, shape index: {}]   ;;  %s113_s2 = inlined_call_operand.vmem [shape: f32[1,32], index: 2, kind: input, shape index: {}]   ;;  %s114_s0 = inlined_call_operand.vmem [shape: f32[2,32], index: 0, kind: input, shape index: {}]   ;;  %s115_s3 = inlined_call_operand.vmem [shape: f32[2,32], index: 3, kind: output, shape index: {}]  }
   0x1   :  { %v18_v0 = vld [vmem:[%s112_s1 + $0x18] sm:$0xff]  ;;  %v17_v1 = vld [vmem:[%s112_s1 + $0x10] sm:$0xff]  ;;  %v16_v2 = vld [vmem:[%s112_s1 + $0x8] sm:$0xff] }
   0x2   :  { %65 = vmatpush.xpose.msk.msra.mxu0 %vm23_vm0, %v18_v0  ;;  %v15_v3 = vld [vmem:[%s112_s1] sm:$0xff] }
   0x3   :  { %v14_v4 = vld [vmem:[%s114_s0] sm:$0x3] }
   0x4   :  { %v70_v5 = vld [vmem:[%s113_s2] ss:$0 sm:$0xff] }
   0x6   :  { %66 = vmatpush.xpose.msk.msra.mxu0 %vm23_vm0, %v17_v1 }
   0xa   :  { %67 = vmatpush.xpose.msk.msra.mxu0 %vm23_vm0, %v16_v2 }
   0xe   :  { %68 = vmatpush.xpose.msk.msra.mxu0 %vm23_vm0, %v15_v3 }
  0x11   :  { %69 = vmatmul.msk.f32.vlgmr.msra.gmra.mxu0 %vm23_vm0, %v14_v4 }
  0x8e   :  { %v56_v6 = vpop.f32.mrf.mxu0 }
  0x8f   :  { %v57_v7 = vadd.f32 %v70_v5, %v56_v6 }
  0x91   :  { %60 = vst.msk [vmem:[%s115_s3] sm:$0x3] %vm59_vm1, %v57_v7 }

</bundles_post_ra>
